<compile_context>
chip_gen: v5e
topology: v5e:2x2
jax: 0.10.0
libtpu: 0.0.40
codegen_flags: <defaults>
</compile_context>

<pallas_src>
import math

import jax
import jax.numpy as jnp
from jax.experimental import pallas as pl
from jax.experimental.pallas import tpu as pltpu


# ----------------------------------------------------------------------------
# Pallas kernel: fused (Linear + PE-folded bias -> ReLU) + per-class Linear(H,1)
# ----------------------------------------------------------------------------
def video_transformer_kernel(x_ref, b1_ref, w1_ref, w2_ref, b2_ref, out_ref):
    # x_ref  : (tm, F)      streamed row block (whole sequences per block)
    # b1_ref : (tm, C*H)    per-position bias = pe @ W1_fused + b1 (VMEM resident)
    # w1_ref : (F, C*H)     fused feature_expansion weights (resident)
    # w2_ref : (C*H, OUTW)  block-diagonal initial_classifiers weights, zero-padded
    # b2_ref : (1, OUTW)    zero-padded biases
    # out_ref: (tm, OUTW)   lane-dense output block
    h = jnp.dot(x_ref[...], w1_ref[...], preferred_element_type=jnp.float32) + b1_ref[...]
    h = jnp.maximum(h, 0.0)  # ReLU (f32 VPU epilogue; safe on v5e too)
    out_ref[...] = (
        jnp.dot(h, w2_ref[...], preferred_element_type=jnp.float32) + b2_ref[...]
    )


# ----------------------------------------------------------------------------
# Glue: PE table, parameters, fusion/padding, block-size choice, pallas_call
# ----------------------------------------------------------------------------
def positional_encoding_table(max_len, d_model):
    position = jnp.arange(max_len, dtype=jnp.float32)[:, None]
    div_term = jnp.exp(
        jnp.arange(0, d_model, 2, dtype=jnp.float32) * (-math.log(10000.0) / d_model)
    )
    pe = jnp.zeros((max_len, d_model), dtype=jnp.float32)
    pe = pe.at[:, 0::2].set(jnp.sin(position * div_term))
    pe = pe.at[:, 1::2].set(jnp.cos(position * div_term))
    return pe  # (max_len, d_model)


def init_params(key, num_classes, feature_dim, hidden_dim):
    k1, k2, k3, k4 = jax.random.split(key, 4)
    # Deterministic synthetic init (shapes match nn.Linear params; (in, out) layout).
    W1 = jax.random.normal(k1, (num_classes, feature_dim, hidden_dim), jnp.float32)
    W1 = W1 / jnp.sqrt(jnp.float32(feature_dim))
    b1 = 0.01 * jax.random.normal(k2, (num_classes, hidden_dim), jnp.float32)
    w2 = jax.random.normal(k3, (num_classes, hidden_dim), jnp.float32)
    w2 = w2 / jnp.sqrt(jnp.float32(hidden_dim))
    b2 = 0.01 * jax.random.normal(k4, (1, num_classes), jnp.float32)
    return {"W1": W1, "b1": b1, "w2": w2, "b2": b2}


def _fuse_params(params, pe, out_width):
    """Fuse the per-class ModuleLists + PositionalEncoding into dense matmul operands."""
    W1, b1, w2, b2 = params["W1"], params["b1"], params["w2"], params["b2"]
    C, F, H = W1.shape
    # (C, F, H) -> (F, C*H): column c*H+h holds class-c expansion weight column h.
    W1_fused = jnp.transpose(W1, (1, 0, 2)).reshape(F, C * H)
    b1_fused = b1.reshape(1, C * H)
    # Fold the PE add into a per-position bias: (x+pe)@W + b == x@W + (pe@W + b).
    b1_eff = pe @ W1_fused + b1_fused  # (T, C*H)
    # Block-diagonal (C*H, C) second weight, zero-padded to a lane-dense output width.
    eye = jnp.eye(C, dtype=w2.dtype)
    w2_bd = (w2[:, :, None] * eye[:, None, :]).reshape(C * H, C)
    w2_pad = jnp.zeros((C * H, out_width), w2.dtype).at[:, :C].set(w2_bd)
    b2_pad = jnp.zeros((1, out_width), b2.dtype).at[:, :C].set(b2)
    return W1_fused, b1_eff, w2_pad, b2_pad


def _choose_row_block(M, T):
    """Rows per grid step: a multiple of lcm(T, 8) (whole sequences + sublane alignment),
    ~512 rows for the HBM-roofline sweet spot, capped so the parallel grid axis keeps
    >= 2 steps when M allows (v7x has 2 TensorCores per chip)."""
    unit = (T * 8) // math.gcd(T, 8)
    tm = max(unit, (512 // unit) * unit)
    tm = min(tm, pl.cdiv(M, unit) * unit)          # never larger than the padded row count
    if M >= 2 * unit:                              # keep >= 2 steps; each still >= unit rows
        tm = min(tm, max(unit, (M // (2 * unit)) * unit))
    return tm


def video_transformer_forward(features, params):
    B, T, F = features.shape
    C, _, H = params["W1"].shape
    CH = C * H
    OUTW = 128 * pl.cdiv(C, 128)  # lane-dense output width -> unmasked vector stores
    M = B * T

    pe = positional_encoding_table(T, F)
    W1_fused, b1_eff, w2_pad, b2_pad = _fuse_params(params, pe, OUTW)

    tm = _choose_row_block(M, T)
    num_steps = pl.cdiv(M, tm)
    M_pad = num_steps * tm

    # TODO(synk): nn.Dropout(p=0.1) inside PositionalEncoding is eval-mode identity here;
    # train-mode parity would need pltpu.prng_seed / prng_random_bits masking.
    x2d = features.reshape(M, F).astype(jnp.float32)
    if M_pad > M:
        x2d = jnp.pad(x2d, ((0, M_pad - M), (0, 0)))  # padded rows are sliced off below

    # Per-position bias replicated to one row block; every block starts on a sequence
    # boundary (tm % T == 0), so a constant index_map keeps it VMEM-resident.
    b1_tile = jnp.tile(b1_eff, (tm // T, 1))  # (tm, C*H)

    # Streamed input spec; deepen buffering only once there are several steps to hide.
    x_spec = pl.BlockSpec((tm, F), lambda r: (r, 0))
    bufs_x = 2
    if num_steps >= 3:
        try:
            x_spec = pl.BlockSpec((tm, F), lambda r: (r, 0), pipeline_mode=pl.Buffered(3))
            bufs_x = 3
        except (TypeError, AttributeError):
            pass  # older jax: fall back to default double-buffering

    # Explicit VMEM budget (x buffers + double-buffered output + residents), clamped so it
    # is valid on v5e (16 MiB scoped default) and v7x (64 MiB physical, 32 MiB scoped).
    vmem_need = 4 * (
        bufs_x * tm * F + 2 * tm * OUTW + tm * CH + F * CH + CH * OUTW + CH + OUTW
    )
    vmem_limit = int(min(max(2 * vmem_need, 16 << 20), 32 << 20))

    cost = pl.CostEstimate(
        flops=2 * M_pad * F * CH + 2 * M_pad * CH * OUTW,
        transcendentals=0,
        bytes_accessed=4 * (M_pad * F + M_pad * OUTW + tm * CH
                            + F * CH + CH * OUTW + CH + OUTW),
    )

    out_padded = pl.pallas_call(
        video_transformer_kernel,
        out_shape=jax.ShapeDtypeStruct((M_pad, OUTW), jnp.float32),
        grid_spec=pltpu.PrefetchScalarGridSpec(
            num_scalar_prefetch=0,
            grid=(num_steps,),
            in_specs=[
                x_spec,                                      # x rows (streamed)
                pl.BlockSpec((tm, CH), lambda r: (0, 0)),    # PE-folded bias (resident)
                pl.BlockSpec((F, CH), lambda r: (0, 0)),     # fused W1 (resident)
                pl.BlockSpec((CH, OUTW), lambda r: (0, 0)),  # block-diag w2, padded
                pl.BlockSpec((1, OUTW), lambda r: (0, 0)),   # b2, padded
            ],
            out_specs=pl.BlockSpec((tm, OUTW), lambda r: (r, 0)),  # lane-dense store
        ),
        compiler_params=pltpu.CompilerParams(
            dimension_semantics=("parallel",),
            vmem_limit_bytes=vmem_limit,
        ),
        cost_estimate=cost,
    )(x2d, b1_tile, W1_fused, w2_pad, b2_pad)

    out = out_padded[:M, :C].reshape(B, T, C)
    # Forward returns the same tensor under both keys (matches the PyTorch module).
    return {"init_output": out, "final_output": out}


def reference_forward(features, params):
    """Pure-JAX reference mirroring the PyTorch forward (eval mode)."""
    B, T, F = features.shape
    pe = positional_encoding_table(T, F)
    x = features + pe[None]                                   # PositionalEncoding
    h = jnp.einsum("btf,cfh->btch", x, params["W1"]) + params["b1"][None, None]
    h = jnp.maximum(h, 0.0)                                   # feature_expansion
    out = jnp.einsum("btch,ch->btc", h, params["w2"]) + params["b2"][0][None, None]
    return out                                                # (B, T, C)


if __name__ == "__main__":
    # Module hyperparameters (num_layers is unused in the reference forward).
    batch = 2
    num_clips = 8       # T (sequence length / max_len of positional encoding)
    num_classes = 4     # C
    feature_dim = 32    # F
    hidden_dim = 32     # H  -> C*H = 128 = one MXU lane width

    key = jax.random.PRNGKey(0)
    k_x, k_p = jax.random.split(key)
    features = jax.random.normal(k_x, (batch, num_clips, feature_dim), jnp.float32)
    params = init_params(k_p, num_classes, feature_dim, hidden_dim)

    acts = video_transformer_forward(features, params)
    out = jax.block_until_ready(acts["final_output"])

    ref = reference_forward(features, params)
    assert out.shape == (batch, num_clips, num_classes)
    assert jnp.allclose(out, ref, atol=1e-5, rtol=1e-5), "Pallas output mismatch vs reference"
    assert jnp.array_equal(acts["init_output"], acts["final_output"])

    print("KERNEL_OK")
</pallas_src>

<mosaic_0001>
module attributes {stable_mosaic.version = 11 : i64} {
  func.func @video_transformer_kernel(%arg0: i32, %arg1: memref<8x32xf32, #tpu.memory_space<vmem>>, %arg2: memref<8x128xf32, #tpu.memory_space<vmem>>, %arg3: memref<32x128xf32, #tpu.memory_space<vmem>>, %arg4: memref<128x128xf32, #tpu.memory_space<vmem>>, %arg5: memref<1x128xf32, #tpu.memory_space<vmem>>, %arg6: memref<8x128xf32, #tpu.memory_space<vmem>>) attributes {dimension_semantics = [#tpu.dimension_semantics<parallel>], iteration_bounds = array<i64: 2>, scalar_prefetch = 0 : i64, scratch_operands = 0 : i64, tpu.core_type = #tpu.core_type<tc>, window_params = [{transform_indices = @transform_0, window_bounds = array<i64: 8, 32>}, {pipeline_mode = #tpu.pipeline_mode<synchronous>, transform_indices = @transform_1, window_bounds = array<i64: 8, 128>}, {pipeline_mode = #tpu.pipeline_mode<synchronous>, transform_indices = @transform_2, window_bounds = array<i64: 32, 128>}, {pipeline_mode = #tpu.pipeline_mode<synchronous>, transform_indices = @transform_3, window_bounds = array<i64: 128, 128>}, {pipeline_mode = #tpu.pipeline_mode<synchronous>, transform_indices = @transform_4, window_bounds = array<i64: 1, 128>}, {transform_indices = @transform_5, window_bounds = array<i64: 8, 128>}]} {
    %c0 = arith.constant 0 : index
    %c0_0 = arith.constant 0 : index
    %0 = vector.load %arg1[%c0, %c0_0] : memref<8x32xf32, #tpu.memory_space<vmem>>, vector<8x32xf32>
    %c0_1 = arith.constant 0 : index
    %c0_2 = arith.constant 0 : index
    %1 = vector.load %arg3[%c0_1, %c0_2] : memref<32x128xf32, #tpu.memory_space<vmem>>, vector<32x128xf32>
    %cst = arith.constant dense<0.000000e+00> : vector<8x128xf32>
    %2 = tpu.matmul %0, %1, %cst {dimension_numbers = #tpu.dot_dimension_numbers<[1], [0], [0], [1], [0, 0, 1, 1], [], []>} : vector<8x32xf32>, vector<32x128xf32>, vector<8x128xf32> -> vector<8x128xf32>
    %c0_3 = arith.constant 0 : index
    %c0_4 = arith.constant 0 : index
    %3 = vector.load %arg2[%c0_3, %c0_4] : memref<8x128xf32, #tpu.memory_space<vmem>>, vector<8x128xf32>
    %4 = arith.addf %2, %3 : vector<8x128xf32>
    %cst_5 = arith.constant 0.000000e+00 : f32
    %5 = vector.broadcast %cst_5 : f32 to vector<8x128xf32>
    %6 = arith.maximumf %4, %5 : vector<8x128xf32>
    %c0_6 = arith.constant 0 : index
    %c0_7 = arith.constant 0 : index
    %7 = vector.load %arg4[%c0_6, %c0_7] : memref<128x128xf32, #tpu.memory_space<vmem>>, vector<128x128xf32>
    %cst_8 = arith.constant dense<0.000000e+00> : vector<8x128xf32>
    %8 = tpu.matmul %6, %7, %cst_8 {dimension_numbers = #tpu.dot_dimension_numbers<[1], [0], [0], [1], [0, 0, 1, 1], [], []>} : vector<8x128xf32>, vector<128x128xf32>, vector<8x128xf32> -> vector<8x128xf32>
    %c0_9 = arith.constant 0 : index
    %c0_10 = arith.constant 0 : index
    %9 = vector.load %arg5[%c0_9, %c0_10] : memref<1x128xf32, #tpu.memory_space<vmem>>, vector<1x128xf32>
    %10 = vector.broadcast %9 : vector<1x128xf32> to vector<8x128xf32>
    %11 = arith.addf %8, %10 : vector<8x128xf32>
    %c0_11 = arith.constant 0 : index
    %c0_12 = arith.constant 0 : index
    %12 = vector.load %arg6[%c0_11, %c0_12] : memref<8x128xf32, #tpu.memory_space<vmem>>, vector<8x128xf32>
    tpu.vector_store %arg6[%c0_11, %c0_12], %11 {strides = array<i32>} : memref<8x128xf32, #tpu.memory_space<vmem>>, vector<8x128xf32>,
    return
  }
  func.func @transform_0(%arg0: i32) -> (i32, i32) {
    %c0_i32 = arith.constant 0 : i32
    %c0_i32_0 = arith.constant 0 : i32
    return %arg0, %c0_i32 : i32, i32
  }
  func.func @transform_1(%arg0: i32) -> (i32, i32) {
    %c0_i32 = arith.constant 0 : i32
    %c0_i32_0 = arith.constant 0 : i32
    %c0_i32_1 = arith.constant 0 : i32
    return %c0_i32, %c0_i32_0 : i32, i32
  }
  func.func @transform_2(%arg0: i32) -> (i32, i32) {
    %c0_i32 = arith.constant 0 : i32
    %c0_i32_0 = arith.constant 0 : i32
    %c0_i32_1 = arith.constant 0 : i32
    return %c0_i32, %c0_i32_0 : i32, i32
  }
  func.func @transform_3(%arg0: i32) -> (i32, i32) {
    %c0_i32 = arith.constant 0 : i32
    %c0_i32_0 = arith.constant 0 : i32
    %c0_i32_1 = arith.constant 0 : i32
    return %c0_i32, %c0_i32_0 : i32, i32
  }
  func.func @transform_4(%arg0: i32) -> (i32, i32) {
    %c0_i32 = arith.constant 0 : i32
    %c0_i32_0 = arith.constant 0 : i32
    %c0_i32_1 = arith.constant 0 : i32
    return %c0_i32, %c0_i32_0 : i32, i32
  }
  func.func @transform_5(%arg0: i32) -> (i32, i32) {
    %c0_i32 = arith.constant 0 : i32
    %c0_i32_0 = arith.constant 0 : i32
    return %arg0, %c0_i32 : i32, i32
  }
}

</mosaic_0001>

<bundles_post_ra>
// kernel: tpu_custom_call.1
= control target key start
LH: loop header
LB: loop body
LE: loop exit
PB: predicated region body
PF: predicated region fallthrough
CT: control target
= control target key end

     0   :  { %10 = vsyncpa [#allocation3], 0  ;;  %s972_s0 = inlined_call_operand.hbm [shape: f32[16,32], index: 0, kind: input, shape index: {}]   ;;  %s973_s1 = inlined_call_operand.hbm [shape: f32[8,128], index: 1, kind: input, shape index: {}]   ;;  %s974_s2 = inlined_call_operand.hbm [shape: f32[32,128], index: 2, kind: input, shape index: {}]   ;;  %s975_s3 = inlined_call_operand.hbm [shape: f32[128,128], index: 3, kind: input, shape index: {}]   ;;  %s976_s4 = inlined_call_operand.vmem [shape: f32[1,128], index: 4, kind: input, shape index: {}]   ;;  %s977_s5 = inlined_call_operand.hbm [shape: f32[16,128], index: 5, kind: output, shape index: {}]  }
   0x1   :  { %12 = vsyncpa [#allocation3 + $0x1], 0 }
   0x2   :  { %13 = vsyncpa [#allocation6], 0 }
   0x3   :  { %14 = vsyncpa [#allocation9], 0 }
   0x4   :  { %15 = vsyncpa [#allocation4], 0 }
   0x5   :  { %17 = vsyncpa [#allocation4 + $0x1], 0  ;;  %s807_s18 = smov 0   ;;  %s809_s19 = smov 0  }
   0x6   :  { %s811_s20 = smov 0   ;;  %s813_s21 = smov 0  }
   0x7 LB: > { %s828_s22 = sadd.s32 4294967295, %s770_s21   ;;  %s477_s23 = sadd.s32 4294967294, %s770_s21   ;;  %s770_s21 = sphi %s813_s21, %s988_s21   ;;  %s766_s20 = sphi %s811_s20, %s987_s20   ;;  %s762_s19 = sphi %s809_s19, %s986_s19   ;;  %s758_s18 = sphi %s807_s18, %s985_s18  }
   0x8   : > { %p43_p0 = scmp.ne.s32.totalorder %s762_s19, %s758_s18  ;;  %p44_p1 = scmp.eq.s32.totalorder %s828_s22, 0 }
   0x9   : > { %p151_p2 = scmp.eq.s32.totalorder %s828_s22, 1  ;;  %p157_p3 = scmp.eq.s32.totalorder %s477_s23, 1 }
   0xa   : > { %p837_p4 = por %p44_p1, %p43_p0  ;;  %p478_p5 = scmp.ge.s32.totalorder %s770_s21, 1 }
   0xb   : > { %p842_p6 = por %p157_p3, %p43_p0  ;;  %p164_p7 = scmp.lt.s32.totalorder %s770_s21, 3 }
   0xc   : > { %s176_s28 = sshll.u32 %s973_s1, 4  ;;  %s772_s30 = smov [#allocation5]   ;;  %s177_s28 = int_to_ptr.hbm [resolvable:$true] %s176_s28 }
   0xd   : > { %p850_p8 = pnand %p478_p5, %p164_p7  ;;  %s178_s6 = sshll.u32 %s772_s30, 4  ;;  %s179_s6 = int_to_ptr.vmem [resolvable:$true] %s178_s6 }
   0xe   : > { %s187_s9 = sshll.u32 %s974_s2, 4  ;;  %s773_s11 = smov [#allocation7]   ;;  %s188_s9 = int_to_ptr.hbm [resolvable:$true] %s187_s9 }
   0xf   : > { %p512_p10 = pneg %p850_p8  ;;  %s189_s12 = sshll.u32 %s773_s11, 4  ;;  %s190_s12 = int_to_ptr.vmem [resolvable:$true] %s189_s12 }
  0x10   : > { %s774_s13 = smov 128   ;;  %s775_s14 = smov 8  }
  0x11   : > { %p862_p11 = pnand %p512_p10, %p44_p1  ;;  %s201_s17 = sshll.u32 %s975_s3, 4  ;;  %s202_s17 = int_to_ptr.hbm [resolvable:$true] %s201_s17 }
  0x12   : > { %s776_s23 = smov [#allocation8]   ;;  %s876_s27 = sadd.s32 1, %s770_s21  }
  0x13   : > { %515 = dma.hbm_to_vmem [thread:$0]  (!%p862_p11), %s177_s28, 128, %s179_s6, [#allocation6]  }
  0x14   : > { %518 = dma.hbm_to_vmem [thread:$0]  (!%p862_p11), %s188_s9, 512, %s190_s12, [#allocation6], %s774_s13, %s774_s13, %s775_s14  }
  0x15   : > { %s203_s26 = sshll.u32 %s776_s23, 4  ;;  %s27_s28 = ssub.s32 %s770_s21, %s876_s27  ;;  %s204_s26 = int_to_ptr.vmem [resolvable:$true] %s203_s26 }
  0x16   : > { %521 = dma.hbm_to_vmem [thread:$0]  (!%p862_p11), %s202_s17, 2048, %s204_s26, [#allocation9], %s774_s13, %s774_s13, %s775_s14  }
  0x17   : > { %s30_s30 = sadd.s32 1, %s766_s20  ;;  %p28_p12 = scmp.eq.s32.totalorder %s27_s28, 0 }
  0x18   : > { %p37_p13 = scmp.ne.s32.totalorder %s766_s20, %s762_s19  ;;  %p38_p0 = scmp.eq.s32.totalorder %s770_s21, 0 }
  0x19   : > { %s885_s6 = scalar_select %p28_p12, %s766_s20, %s30_s30  }
  0x1a   : > { %p889_p3 = por %p151_p2, %p37_p13  ;;  %p533_p5 = scmp.lt.s32.totalorder %s770_s21, 2 }
  0x1b   : > { %s220_s8 = sand.u32 1, %s766_s20   ;;  %s484_s9 = sshll.u32 %s770_s21, 3 }
  0x1c   : > { %p39_p7 = por %p38_p0, %p37_p13  ;;  %s483_s10 = sshll.u32 %s220_s8, 3 }
  0x1d   : > { %s228_s13 = scalar_lea.hbm %s972_s0, %s484_s9  ;;  %s224_s15 = scalar_lea.vmem [#allocation2], %s483_s10 }
  0x1e   : > { %s230_s14 = sshll.u32 %s228_s13, 4  ;;  %s232_s16 = sshll.u32 %s224_s15, 4  ;;  %s231_s14 = int_to_ptr.hbm [resolvable:$true] %s230_s14  ;;  %s233_s16 = int_to_ptr.vmem [resolvable:$true] %s232_s16 }
  0x1f   : > { %p899_p10 = pnand %p533_p5, %p39_p7  ;;  %s221_s23 = scalar_lea.sflag [#allocation3], %s220_s8 }
  0x20   : > { %s666_s26 = sshra.s32 %s231_s14, 4  ;;  %s673_s10 = scalar_lea.hbm %s972_s0, 16  ;;  %s667_s26 = int_to_ptr.hbm [resolvable:$true] %s666_s26 }
  0x21   : > { %s668_s28 = scalar_lea.hbm %s667_s26, 8  ;;  %p670_p11 = pneg %p899_p10 }
  0x22   : > { %p669_p2 = scmp.ne.s32.totalorder %s667_s26, %s668_s28  ;;  %p674_p0 = scmp.lt.s32.totalorder %s667_s26, %s972_s0 }
  0x23   : > { %p675_p5 = scmp.lt.s32.totalorder %s673_s10, %s668_s28 }
  0x24   : > { %p671_p12 = pnand %p670_p11, %p669_p2 }
  0x25   : > { %p676_p7 = por %p675_p5, %p674_p0 }
  0x26   : > { %p672_p13 = pneg %p671_p12 }
  0x28   : > { %p677_p9 = pnand %p676_p7, %p672_p13 }
  0x2a   : > { %680 = shalt.err (!%p677_p9)
}
  0x2b   : > { %525 = dma.hbm_to_vmem [thread:$0]  (!%p899_p10), %s231_s14, 128, %s233_s16, %s221_s23  }
  0x2c   : > { %241 = sbr.rel (%p850_p8) target bundleno = 323 (0x143), region = 40  ;;  %s916_s8 = sand.u32 (!%p850_p8), 1, %s762_s19  }
  0x2d   : > { %s486_s13 = sshll.u32 (!%p850_p8), %s916_s8, 3  ;;  %s244_s15 = scalar_lea.sflag (!%p850_p8), [#allocation3], %s916_s8 }
  0x2e   : > { %s247_s26 = scalar_lea.vmem (!%p850_p8), [#allocation2], %s486_s13 }
  0x31   : > { %741 = dma.done.wait (%p837_p4), %s244_s15, 128  }
  0x32   : > { %743 = vsyncadd (%p837_p4), %s244_s15, 4294967168 }
  0x33   : > { %745 = dma.done.wait (%p44_p1), [#allocation6], 640  }
  0x34   : > { %747 = vsyncadd (%p44_p1), [#allocation6], 4294966656 }
  0x35   : > { %749 = dma.done.wait (%p44_p1), [#allocation9], 2048  }
  0x36   : > { %751 = vsyncadd (%p44_p1), [#allocation9], 4294965248  ;;  %v294_v0 = vld [vmem:[#allocation7 + $0x18] sm:$0xff]  ;;  %v293_v1 = vld [vmem:[#allocation7 + $0x10] sm:$0xff]  ;;  %vm296_vm0 = vcmask 261120   ;;  %s493_s24 = sshll.u32 %s828_s22, 3 }
  0x37   : > { %312 = vmatpush.msra.mxu0 %v294_v0  ;;  %v336_v2 = vld [vmem:[#allocation8 + $0x78] sm:$0xff]  ;;  %v292_v3 = vld [vmem:[#allocation7 + $0x8] sm:$0xff]  ;;  %v335_v4 = vld [vmem:[#allocation8 + $0x70] sm:$0xff]  ;;  %s373_s16 = scalar_lea.hbm %s977_s5, %s493_s24  ;;  %s289_s28 = scalar_lea.vmem [#allocation10], %s486_s13 }
  0x38   : > { %341 = vmatpush.msra.mxu1 %v336_v2  ;;  %v334_v5 = vld [vmem:[#allocation8 + $0x68] sm:$0xff]  ;;  %v291_v6 = vld [vmem:[#allocation7] sm:$0xff]  ;;  %v332_v9 = vld [vmem:[#allocation8 + $0x58] sm:$0xff]  ;;  %s375_s30 = sshll.u32 %s289_s28, 4  ;;  %s377_s9 = sshll.u32 %s373_s16, 4  ;;  %s376_s30 = int_to_ptr.vmem [resolvable:$true] %s375_s30  ;;  %s378_s9 = int_to_ptr.hbm [resolvable:$true] %s377_s9 }
  0x39   : > { %313 = vmatpush.msra.mxu0 %v293_v1  ;;  %v290_v7 = vld [vmem:[%s247_s26] sm:$0xff]  ;;  %v333_v8 = vld [vmem:[#allocation8 + $0x60] sm:$0xff]  ;;  %v328_v13 = vld [vmem:[#allocation8 + $0x38] sm:$0xff]  ;;  %s363_s10 = scalar_lea.sflag [#allocation4], %s916_s8  ;;  %s710_s22 = sshra.s32 %s378_s9, 4  ;;  %s711_s22 = int_to_ptr.hbm [resolvable:$true] %s710_s22 }
  0x3a   : > { %342 = vmatpush.msra.mxu1 %v335_v4  ;;  %v331_v10 = vld [vmem:[#allocation8 + $0x50] sm:$0xff]  ;;  %v330_v11 = vld [vmem:[#allocation8 + $0x48] sm:$0xff]  ;;  %v329_v12 = vld [vmem:[#allocation8 + $0x40] sm:$0xff]  ;;  %s712_s11 = scalar_lea.hbm %s711_s22, 8  ;;  %s716_s26 = scalar_lea.hbm %s977_s5, 16 }
  0x3b   : > { %314 = vmatpush.msra.mxu0 %v292_v3  ;;  %v327_v14 = vld [vmem:[#allocation8 + $0x30] sm:$0xff]  ;;  %v326_v15 = vld [vmem:[#allocation8 + $0x28] sm:$0xff]  ;;  %v325_v16 = vld [vmem:[#allocation8 + $0x20] sm:$0xff]  ;;  %p713_p1 = scmp.ne.s32.totalorder %s711_s22, %s712_s11  ;;  %p717_p9 = scmp.lt.s32.totalorder %s711_s22, %s977_s5 }
  0x3c   : > { %343 = vmatpush.msra.mxu1 %v334_v5  ;;  %v324_v17 = vld [vmem:[#allocation8 + $0x18] sm:$0xff]  ;;  %v323_v18 = vld [vmem:[#allocation8 + $0x10] sm:$0xff]  ;;  %v322_v19 = vld [vmem:[#allocation8 + $0x8] sm:$0xff]  ;;  %p718_p10 = scmp.lt.s32.totalorder %s716_s26, %s712_s11 }
  0x3d   : > { %315 = vmatpush.msra.mxu0 %v291_v6  ;;  %v321_v20 = vld [vmem:[#allocation8] sm:$0xff]  ;;  %v295_v21 = vld [vmem:[#allocation5] sm:$0xff]  ;;  %v575_v25 = vld [vmem:[%s976_s4] ss:$0 sm:$0xff]  ;;  %p714_p4 = pnand %p713_p1, %p889_p3 }
  0x3e   : > { %491 = vmatmul.msk.f32.vlgmr.msra.gmra.mxu0 %vm296_vm0, %v290_v7  ;;  %344 = vmatpush.msra.mxu1 %v333_v8  ;;  %p719_p2 = por %p718_p10, %p717_p9 }
  0x3f   : > { %p715_p8 = pneg %p714_p4 }
  0x40   : > { %345 = vmatpush.msra.mxu1 %v332_v9 }
  0x41   : > { %p720_p11 = pnand %p719_p2, %p715_p8 }
  0x42   : > { %346 = vmatpush.msra.mxu1 %v331_v10 }
  0x44   : > { %347 = vmatpush.msra.mxu1 %v330_v11 }
  0x46   : > { %348 = vmatpush.msra.mxu1 %v329_v12 }
  0x48   : > { %349 = vmatpush.msra.mxu1 %v328_v13 }
  0x4a   : > { %350 = vmatpush.msra.mxu1 %v327_v14 }
  0x4c   : > { %351 = vmatpush.msra.mxu1 %v326_v15 }
  0x4e   : > { %352 = vmatpush.msra.mxu1 %v325_v16 }
  0x50   : > { %353 = vmatpush.msra.mxu1 %v324_v17 }
  0x52   : > { %354 = vmatpush.msra.mxu1 %v323_v18 }
  0x54   : > { %355 = vmatpush.msra.mxu1 %v322_v19 }
  0x56   : > { %356 = vmatpush.msra.mxu1 %v321_v20 }
  0xbb   : > { %v317_v22 = vpop.f32.mrf.mxu0 }
  0xbc   : > { %v318_v23 = vadd.f32 %v317_v22, %v295_v21 }
  0xbe   : > { %v320_v24 = vmax.f32 %v318_v23, 0.0 }
  0xc0   : > { %357 = vmatmul.f32.vlgmr.msra.gmra.mxu1 %v320_v24 }
 0x13d   : > { %v358_v26 = vpop.f32.mrf.mxu1 }
 0x13e   : > { %v359_v27 = vadd.f32 %v575_v25, %v358_v26 }
 0x140   : > { %361 = vst [vmem:[%s289_s28] sm:$0xff] %v359_v27 }
 0x141   : > { %723 = shalt.err (!%p720_p11)
}
 0x142   : > { %510 = dma.vmem_to_hbm [thread:$0]  (%p889_p3), %s376_s30, 128, %s378_s9, %s363_s10  }
 0x143 PF: > { %s389_s8 = sand.u32 1, %s758_s18   ;;  %p984_p12 = scmp.ge.s32.totalorder %s770_s21, 2 }
 0x144   : > { %s390_s29 = scalar_lea.sflag [#allocation4], %s389_s8 }
 0x145   : > { %p527_p13 = pnand %p984_p12, %p842_p6 }
 0x147   : > { %p528_p0 = pneg %p527_p13 }
 0x149   : > { %753 = dma.done.wait (%p528_p0), %s390_s29, 128  }
 0x14a   : > { %755 = vsyncadd (%p528_p0), %s390_s29, 4294967168  ;;  %p20_p5 = scmp.ge.s32.totalorder %s876_s27, 4   ;;  %s985_s18 = smov %s762_s19 }
 0x14b   : > { %s986_s19 = smov %s766_s20  ;;  %s987_s20 = smov %s885_s6 }
 0x14c   : > { %s988_s21 = smov %s876_s27  ;;  %22 = sbr.rel (!%p20_p5) target bundleno = 7 (0x7), region = 97 }
 0x151   :  { %396 = vsyncpa [#allocation3], 1 }
 0x152   :  { %398 = vsyncpa [#allocation3 + $0x1], 1 }
 0x153   :  { %399 = vsyncpa [#allocation6], 1 }
 0x154   :  { %400 = vsyncpa [#allocation9], 1 }
 0x155   :  { %401 = vsyncpa [#allocation4], 1 }
 0x156   :  { %403 = vsyncpa [#allocation4 + $0x1], 1 }

</bundles_post_ra>
